<compile_context>
chip_gen: v6e
topology: v6e:2x2x1
jax: 0.10.0
libtpu: 0.0.40
codegen_flags: <defaults>
</compile_context>

<pallas_src>
import math
from functools import partial

import numpy as np

import jax
import jax.numpy as jnp
from jax.experimental import pallas as pl
from jax.experimental.pallas import tpu as pltpu


def _cdiv(a, b):
    return -(-a // b)


# ----------------------------------------------------------------------------
# Kernel 1: fused CLS ProSelfLC loss + teacher batch-sum (for the center EMA).
# ----------------------------------------------------------------------------
def _cls_loss_kernel(s_ref, t_ref, c_ref, loss_ref, csum_ref, *,
                     inv_student_temp, inv_teacher_temp, global_trust,
                     inv_h_uniform, n_batch, tb, inner, may_have_tail):
    i = pl.program_id(0)
    j = pl.program_id(1)

    @pl.when(j == 0)
    def _():
        loss_ref[...] = jnp.zeros_like(loss_ref)
        csum_ref[...] = jnp.zeros_like(csum_ref)

    t_raw = t_ref[...].astype(jnp.float32)                    # (tb, Lc, D)

    # Student: one exp pass reused for probs, log-probs and entropy.
    s = s_ref[...].astype(jnp.float32) * inv_student_temp
    s = s - jnp.max(s, axis=-1, keepdims=True)
    e = jnp.exp(s)
    sum_e = jnp.sum(e, axis=-1, keepdims=True)
    pred = e * pl.reciprocal(sum_e, approx=True)              # softmax(student/Ts)
    lp = s - jnp.log(sum_e)                                   # log softmax(student/Ts)

    # Teacher: softmax(softmax((t - center)/Tt)).  The outer softmax needs no
    # max-subtraction (its inputs are already in (0, 1]).
    t = (t_raw - c_ref[...]) * inv_teacher_temp
    t = t - jnp.max(t, axis=-1, keepdims=True)
    e1 = jnp.exp(t)
    p1 = e1 * pl.reciprocal(jnp.sum(e1, axis=-1, keepdims=True), approx=True)
    e2 = jnp.exp(p1)
    target = e2 * pl.reciprocal(jnp.sum(e2, axis=-1, keepdims=True), approx=True)

    # ProSelfLC: epsilon = global_trust * (1 - H(pred)/H(uniform))
    h_pred = jnp.sum(-pred * lp, axis=-1, keepdims=True)      # (tb, Lc, 1)
    eps = global_trust * (1.0 - h_pred * inv_h_uniform)
    new_target = (1.0 - eps) * target + eps * pred
    contrib = -new_target * lp                                # (tb, Lc, D)

    def _accumulate(c, traw):
        # Lane-dense accumulation into the resident (1,1,D)/(1,Lc,D) blocks.
        loss_ref[...] += jnp.sum(jnp.sum(c, axis=0, keepdims=True),
                                 axis=1, keepdims=True)
        csum_ref[...] += jnp.sum(traw, axis=0, keepdims=True)

    if may_have_tail:
        base = (i * inner + j) * tb
        full = base + tb <= n_batch

        @pl.when(full)
        def _():
            _accumulate(contrib, t_raw)

        @pl.when(jnp.logical_not(full))
        def _():
            bidx = base + jax.lax.broadcasted_iota(jnp.int32, (tb, 1, 1), 0)
            valid = bidx < n_batch
            # where (not multiply): garbage tail reads must not leak NaN*0.
            _accumulate(jnp.where(valid, contrib, 0.0),
                        jnp.where(valid, t_raw, 0.0))
    else:
        _accumulate(contrib, t_raw)


def proselflc_cls_loss_and_center_sum(student_cls, teacher_cls, center3, *,
                                      student_temp, teacher_temp, global_trust,
                                      vmem_target_bytes=20 * 1024 * 1024,
                                      vmem_limit_bytes=48 * 1024 * 1024):
    """Returns (ProSelfLC mean loss, sum over batch of raw teacher_cls)."""
    n, lc, d = student_cls.shape
    assert teacher_cls.shape == (n, lc, d)
    assert center3.shape == (1, lc, d)

    # VMEM-budgeted batch tile: 2 double-buffered inputs + ~6 live f32
    # full-tile temporaries (s, e, pred, lp, target, contrib).
    in_bytes = student_cls.dtype.itemsize + teacher_cls.dtype.itemsize
    live_per_row = lc * d * (2 * in_bytes + 6 * 4)
    tb = max(1, int(vmem_target_bytes // live_per_row))
    tb = min(tb, n)

    total_tiles = _cdiv(n, tb)
    n_chunks = 2 if total_tiles >= 4 else 1     # 2 even shards for v7x megacore
    inner = _cdiv(total_tiles, n_chunks)
    # No host-side padding: ragged tails / duplicate last step are guarded
    # in-kernel and the block index is clamped so no DMA is fully out of range.
    may_have_tail = (n % tb != 0) or (n_chunks * inner != total_tiles)
    tmax = total_tiles - 1

    kernel = partial(
        _cls_loss_kernel,
        inv_student_temp=float(1.0 / student_temp),
        inv_teacher_temp=float(1.0 / teacher_temp),
        global_trust=float(global_trust),
        inv_h_uniform=float(1.0 / math.log(d)),
        n_batch=int(n), tb=int(tb), inner=int(inner),
        may_have_tail=bool(may_have_tail))

    def in_map(i, j, inner=inner, tmax=tmax):
        return (jnp.minimum(i * inner + j, tmax), 0, 0)

    loss_parts, center_parts = pl.pallas_call(
        kernel,
        out_shape=(jax.ShapeDtypeStruct((n_chunks, 1, d), jnp.float32),
                   jax.ShapeDtypeStruct((n_chunks, lc, d), jnp.float32)),
        grid=(n_chunks, inner),
        in_specs=[
            pl.BlockSpec((tb, lc, d), in_map),
            pl.BlockSpec((tb, lc, d), in_map),
            pl.BlockSpec((1, lc, d), lambda i, j: (0, 0, 0)),
        ],
        out_specs=(
            pl.BlockSpec((1, 1, d), lambda i, j: (i, 0, 0)),
            pl.BlockSpec((1, lc, d), lambda i, j: (i, 0, 0)),
        ),
        compiler_params=pltpu.CompilerParams(
            dimension_semantics=("parallel", "arbitrary"),
            vmem_limit_bytes=int(vmem_limit_bytes)),
    )(student_cls, teacher_cls, center3)

    loss = jnp.sum(loss_parts) / float(n * lc)                  # mean over examples
    teacher_sum = jnp.sum(center_parts, axis=0, keepdims=True)  # (1, lc, d)
    return loss, teacher_sum


# ----------------------------------------------------------------------------
# Kernel 2: patch loss — masked BCEWithLogits (mean over masked elements).
# masks_new = tile(masks,(5,1,1)).reshape(preds.shape): in the flat (rows, D)
# view the mask rows repeat with period rows_m = masks.shape[0]*masks.shape[1],
# so viewing preds as (5, rows_m, D) makes the replication a pure index_map.
# ----------------------------------------------------------------------------
def _masked_bce_kernel(x_ref, y_ref, m_ref, loss_ref, *, inv_student_temp,
                       tr, rows_m, needs_guard):
    @pl.when(pl.program_id(1) == 0)
    def _():
        loss_ref[...] = jnp.zeros_like(loss_ref)

    x = x_ref[...].astype(jnp.float32) * inv_student_temp   # logits = patch / T_s
    y = y_ref[...].astype(jnp.float32)
    msk = (m_ref[...] == 1).astype(jnp.float32)
    # numerically stable elementwise BCE-with-logits
    bce = jnp.maximum(x, 0.0) - x * y + jnp.log1p(jnp.exp(-jnp.abs(x)))
    contrib = bce * msk                                      # (1, tr, D)
    if needs_guard:
        rbase = pl.program_id(1) * tr
        ridx = rbase + jax.lax.broadcasted_iota(jnp.int32, (1, tr, 1), 1)
        contrib = jnp.where(ridx < rows_m, contrib, 0.0)     # guard ragged tail
    loss_ref[...] += jnp.sum(contrib, axis=1, keepdims=True)


def masked_bce_with_logits_mean(student_patch, labels, masks, *, student_temp,
                                vmem_target_bytes=20 * 1024 * 1024,
                                vmem_limit_bytes=48 * 1024 * 1024):
    b, l, d = student_patch.shape
    bm, lm, dm = masks.shape
    # The reference's reshape requires preds.numel == 5 * masks.numel.
    assert b * l == 5 * bm * lm and d == dm
    rows_m = bm * lm

    # Row-major reshapes are free (no HBM copy).
    x3 = student_patch.reshape(5, rows_m, d)
    y3 = labels.reshape(5, rows_m, d)
    m3 = (masks == 1).astype(jnp.int8).reshape(1, rows_m, d)   # tiny array

    # VMEM-budgeted row tile: double-buffered (x f32 + y + mask i8) inputs plus
    # ~5 live f32 full-tile temporaries.
    in_bytes = student_patch.dtype.itemsize + labels.dtype.itemsize + 1
    live_per_row = d * (2 * in_bytes + 5 * 4)
    tr = max(32, int(vmem_target_bytes // live_per_row) // 32 * 32)
    if rows_m <= tr:
        tr = rows_m                       # full-extent block, no tiling constraint
    nj = _cdiv(rows_m, tr)
    needs_guard = (rows_m % tr) != 0      # guard compiled out when evenly divisible

    kernel = partial(_masked_bce_kernel,
                     inv_student_temp=float(1.0 / student_temp),
                     tr=int(tr), rows_m=int(rows_m),
                     needs_guard=bool(needs_guard))

    loss_parts = pl.pallas_call(
        kernel,
        out_shape=jax.ShapeDtypeStruct((5, 1, d), jnp.float32),
        grid=(5, nj),
        in_specs=[
            pl.BlockSpec((1, tr, d), lambda k, j: (k, j, 0)),
            pl.BlockSpec((1, tr, d), lambda k, j: (k, j, 0)),
            pl.BlockSpec((1, tr, d), lambda k, j: (0, j, 0)),   # mask replicated x5
        ],
        out_specs=pl.BlockSpec((1, 1, d), lambda k, j: (k, 0, 0)),
        compiler_params=pltpu.CompilerParams(
            dimension_semantics=("parallel", "arbitrary"),
            vmem_limit_bytes=int(vmem_limit_bytes)),
    )(x3, y3, m3)

    loss_sum = jnp.sum(loss_parts)
    # masked-element count from the tiny host-side mask; guard all-zero mask.
    cnt = 5.0 * jnp.sum((masks == 1).astype(jnp.float32))
    return loss_sum / jnp.maximum(cnt, 1.0)


# ----------------------------------------------------------------------------
# Module wrapper
# ----------------------------------------------------------------------------
class ProSelfLCLossPallas:
    def __init__(self, params, out_dim, patch_out_dim, ngcrops, nlcrops,
                 warmup_teacher_temp, teacher_temp, warmup_teacher_temp2,
                 teacher_temp2, warmup_teacher_temp_epochs, nepochs,
                 student_temp=0.1, center_momentum=0.9, center_momentum2=0.9,
                 lambda1=1.0, lambda2=1.0, mim_start_epoch=0, length=1000):
        self.params = params
        self.student_temp = student_temp
        self.center_momentum = center_momentum
        self.center_momentum2 = center_momentum2
        self.ngcrops = ngcrops
        self.nlcrops = nlcrops
        self.ncrops = ngcrops + nlcrops
        self.lambda1 = lambda1
        self.lambda2 = lambda2
        self.none_cls_length = length
        # buffers (deterministic init, as in register_buffer(zeros))
        self.center = jnp.zeros((1, out_dim), jnp.float32)
        self.center2 = jnp.zeros((1, 1, out_dim), jnp.float32)   # unused (dead code in ref)
        self.teacher_temp_schedule = np.concatenate(
            (np.linspace(warmup_teacher_temp, teacher_temp, warmup_teacher_temp_epochs),
             np.ones(nepochs - warmup_teacher_temp_epochs) * teacher_temp))
        if mim_start_epoch == 0:
            self.teacher_temp2_schedule = np.concatenate(
                (np.linspace(warmup_teacher_temp2, teacher_temp2, warmup_teacher_temp_epochs),
                 np.ones(nepochs - warmup_teacher_temp_epochs) * teacher_temp2))
        else:
            self.teacher_temp2_schedule = np.concatenate(
                (np.ones(mim_start_epoch) * warmup_teacher_temp2,
                 np.linspace(warmup_teacher_temp2, teacher_temp2, warmup_teacher_temp_epochs),
                 np.ones(nepochs - warmup_teacher_temp_epochs - mim_start_epoch) * teacher_temp2))

    def __call__(self, student_output, teacher_output, student_local_cls,
                 student_mask, epoch):
        s_pred, s_labels, s_masks = student_output
        L = self.none_cls_length

        student_patch = s_pred[:, :L, :]
        student_cls = s_pred[:, L:, :]
        teacher_cls = teacher_output[:, L:, :]
        # teacher_patch / teacher_patch_c are dead code in the reference forward.

        if student_local_cls is not None:
            # TODO(synk): with local crops the reference feeds mismatched batch sizes
            # into ProSelfLC (would fail there too); the fused kernel requires equal shapes.
            student_cls = jnp.concatenate([student_cls, student_local_cls], axis=0)

        temp = float(self.teacher_temp_schedule[epoch])
        _ = float(self.teacher_temp2_schedule[epoch])   # temp2: dead in the reference

        # ProSelfLC global trust (epoch-level schedule)
        total_epochs = float(self.params["total_epochs"])
        exp_base = float(self.params["exp_base"])
        transit = float(self.params["transit_time_ratio"])
        global_trust = 1.0 / (1.0 + math.exp(-exp_base * (epoch / total_epochs - transit)))

        b, lc, d = teacher_cls.shape
        # Handle both the initial (1, D) center and the post-update (1, Lc, D) center
        # (the reference's broadcast drift), so repeated calls are well-defined.
        if self.center.ndim == 2:
            center3 = jnp.broadcast_to(self.center[:, None, :], (1, lc, d)).astype(jnp.float32)
        else:
            center3 = self.center.astype(jnp.float32)

        # ---- CLS ProSelfLC loss + fused raw-teacher batch-sum (Pallas) ----
        # TODO(synk): ProSelfLC class is not in the reference source; canonical
        # ProSelfLC with classes on the last axis is implemented in the kernel.
        loss1, teacher_sum = proselflc_cls_loss_and_center_sum(
            student_cls, teacher_cls, center3,
            student_temp=self.student_temp, teacher_temp=temp,
            global_trust=global_trust)

        # ---- Patch loss: pretrain_loss == masked-mean BCEWithLogits (Pallas) ----
        # The raw small mask is passed directly; its x5 replication is done in the
        # kernel's BlockSpec index_map (masks_new is never materialized in HBM).
        loss2 = masked_bce_with_logits_mean(
            student_patch, s_labels, s_masks, student_temp=self.student_temp)

        total_loss1 = loss1 * self.lambda1
        total_loss2 = loss2 * self.lambda2
        total_loss = dict(cls=total_loss1, patch=total_loss2,
                          loss=total_loss1 + total_loss2)

        # ---- update_center: EMA on the kernel-fused batch sum (reference
        #      semantics, including the [1,D] -> [1,Lc,D] broadcast) ----
        cls_center = teacher_sum / float(b)
        self.center = (center3 * self.center_momentum
                       + cls_center * (1.0 - self.center_momentum))
        return total_loss


if __name__ == "__main__":
    key = jax.random.PRNGKey(0)
    B, length, Lc, D = 2, 10, 4, 128      # batch, patch tokens, cls tokens, out_dim
    Ltot = length + Lc
    nepochs = 10

    proselflc_params = {"total_epochs": nepochs, "exp_base": 1.0,
                        "transit_time_ratio": 0.5, "counter": "epoch"}

    loss_mod = ProSelfLCLossPallas(
        proselflc_params, out_dim=D, patch_out_dim=D, ngcrops=2, nlcrops=0,
        warmup_teacher_temp=0.04, teacher_temp=0.07,
        warmup_teacher_temp2=0.04, teacher_temp2=0.07,
        warmup_teacher_temp_epochs=3, nepochs=nepochs,
        student_temp=0.1, lambda1=1.0, lambda2=1.0, length=length)

    k1, k2, k3, k4 = jax.random.split(key, 4)
    student_pred = jax.random.normal(k1, (B, Ltot, D), jnp.float32)
    teacher_out = jax.random.normal(k2, (B, Ltot, D), jnp.float32)
    labels = (jax.random.uniform(k3, (B, length, D)) > 0.5).astype(jnp.float32)
    # small mask, as passed to pretrain_loss (it gets tiled x5 inside the loss)
    masks = (jax.random.uniform(k4, (B, length // 5, D)) > 0.5).astype(jnp.int32)

    student_output = (student_pred, labels, masks)

    out = loss_mod(student_output, teacher_out, None, None, epoch=2)
    jax.block_until_ready(out["loss"])
    # second call exercises the (1, Lc, D) center produced by update_center
    out2 = loss_mod(student_output, teacher_out, None, None, epoch=3)
    jax.block_until_ready(out2["loss"])
    jax.block_until_ready(loss_mod.center)

    assert np.isfinite(float(out["cls"])) and np.isfinite(float(out["patch"]))
    assert np.isfinite(float(out2["loss"]))
    assert loss_mod.center.shape == (1, Lc, D)
    print("KERNEL_OK")
</pallas_src>

<mosaic_0001>
module attributes {stable_mosaic.version = 11 : i64} {
  func.func @_cls_loss_kernel(%arg0: i32, %arg1: i32, %arg2: memref<2x4x128xf32, #tpu.memory_space<vmem>>, %arg3: memref<2x4x128xf32, #tpu.memory_space<vmem>>, %arg4: memref<1x4x128xf32, #tpu.memory_space<vmem>>, %arg5: memref<1x1x128xf32, #tpu.memory_space<vmem>>, %arg6: memref<1x4x128xf32, #tpu.memory_space<vmem>>) attributes {dimension_semantics = [#tpu.dimension_semantics<parallel>, #tpu.dimension_semantics<arbitrary>], iteration_bounds = array<i64: 1, 1>, scalar_prefetch = 0 : i64, scratch_operands = 0 : i64, tpu.core_type = #tpu.core_type<tc>, window_params = [{transform_indices = @transform_0, window_bounds = array<i64: 2, 4, 128>}, {transform_indices = @transform_1, window_bounds = array<i64: 2, 4, 128>}, {pipeline_mode = #tpu.pipeline_mode<synchronous>, transform_indices = @transform_2, window_bounds = array<i64: 1, 4, 128>}, {transform_indices = @transform_3, window_bounds = array<i64: 1, 1, 128>}, {transform_indices = @transform_4, window_bounds = array<i64: 1, 4, 128>}]} {
    %c0_i32 = arith.constant 0 : i32
    %0 = arith.cmpi eq, %arg1, %c0_i32 : i32
    %1 = arith.extui %0 : i1 to i32
    %c0_i32_0 = arith.constant 0 : i32
    %2 = arith.cmpi ne, %1, %c0_i32_0 : i32
    scf.if %2 {
      %cst_37 = arith.constant 0.000000e+00 : f32
      %74 = vector.broadcast %cst_37 : f32 to vector<1x1x128xf32>
      %c0_38 = arith.constant 0 : index
      %c0_39 = arith.constant 0 : index
      %c0_40 = arith.constant 0 : index
      %75 = vector.load %arg5[%c0_38, %c0_39, %c0_40] : memref<1x1x128xf32, #tpu.memory_space<vmem>>, vector<1x1x128xf32>
      tpu.vector_store %arg5[%c0_38, %c0_39, %c0_40], %74 {strides = array<i32>} : memref<1x1x128xf32, #tpu.memory_space<vmem>>, vector<1x1x128xf32>,
      %cst_41 = arith.constant 0.000000e+00 : f32
      %76 = vector.broadcast %cst_41 : f32 to vector<1x4x128xf32>
      %c0_42 = arith.constant 0 : index
      %c0_43 = arith.constant 0 : index
      %c0_44 = arith.constant 0 : index
      %77 = vector.load %arg6[%c0_42, %c0_43, %c0_44] : memref<1x4x128xf32, #tpu.memory_space<vmem>>, vector<1x4x128xf32>
      tpu.vector_store %arg6[%c0_42, %c0_43, %c0_44], %76 {strides = array<i32>} : memref<1x4x128xf32, #tpu.memory_space<vmem>>, vector<1x4x128xf32>,
    } else {
    }
    %c0 = arith.constant 0 : index
    %c0_1 = arith.constant 0 : index
    %c0_2 = arith.constant 0 : index
    %3 = vector.load %arg3[%c0, %c0_1, %c0_2] : memref<2x4x128xf32, #tpu.memory_space<vmem>>, vector<2x4x128xf32>
    %c0_3 = arith.constant 0 : index
    %c0_4 = arith.constant 0 : index
    %c0_5 = arith.constant 0 : index
    %4 = vector.load %arg2[%c0_3, %c0_4, %c0_5] : memref<2x4x128xf32, #tpu.memory_space<vmem>>, vector<2x4x128xf32>
    %cst = arith.constant 1.000000e+01 : f32
    %5 = vector.broadcast %cst : f32 to vector<2x4x128xf32>
    %6 = arith.mulf %4, %5 : vector<2x4x128xf32>
    %cst_6 = arith.constant dense<0xFF800000> : vector<2x4xf32>
    %7 = vector.multi_reduction <maximumf>, %6, %cst_6 [2] : vector<2x4x128xf32> to vector<2x4xf32>
    %8 = vector.shape_cast %7 : vector<2x4xf32> to vector<2x4x1xf32>
    %9 = vector.broadcast %8 : vector<2x4x1xf32> to vector<2x4x128xf32>
    %10 = arith.subf %6, %9 : vector<2x4x128xf32>
    %11 = math.exp %10 : vector<2x4x128xf32>
    %cst_7 = arith.constant dense<0.000000e+00> : vector<2x4xf32>
    %12 = vector.multi_reduction <add>, %11, %cst_7 [2] : vector<2x4x128xf32> to vector<2x4xf32>
    %13 = vector.shape_cast %12 : vector<2x4xf32> to vector<2x4x1xf32>
    %14 = tpu.reciprocal %13 {approx = true} : vector<2x4x1xf32> -> vector<2x4x1xf32>
    %15 = vector.broadcast %14 : vector<2x4x1xf32> to vector<2x4x128xf32>
    %16 = arith.mulf %11, %15 : vector<2x4x128xf32>
    %17 = math.log %13 : vector<2x4x1xf32>
    %18 = vector.broadcast %17 : vector<2x4x1xf32> to vector<2x4x128xf32>
    %19 = arith.subf %10, %18 : vector<2x4x128xf32>
    %c0_8 = arith.constant 0 : index
    %c0_9 = arith.constant 0 : index
    %c0_10 = arith.constant 0 : index
    %20 = vector.load %arg4[%c0_8, %c0_9, %c0_10] : memref<1x4x128xf32, #tpu.memory_space<vmem>>, vector<1x4x128xf32>
    %21 = vector.broadcast %20 : vector<1x4x128xf32> to vector<2x4x128xf32>
    %22 = arith.subf %3, %21 : vector<2x4x128xf32>
    %cst_11 = arith.constant 14.2857141 : f32
    %23 = vector.broadcast %cst_11 : f32 to vector<2x4x128xf32>
    %24 = arith.mulf %22, %23 : vector<2x4x128xf32>
    %cst_12 = arith.constant dense<0xFF800000> : vector<2x4xf32>
    %25 = vector.multi_reduction <maximumf>, %24, %cst_12 [2] : vector<2x4x128xf32> to vector<2x4xf32>
    %26 = vector.shape_cast %25 : vector<2x4xf32> to vector<2x4x1xf32>
    %27 = vector.broadcast %26 : vector<2x4x1xf32> to vector<2x4x128xf32>
    %28 = arith.subf %24, %27 : vector<2x4x128xf32>
    %29 = math.exp %28 : vector<2x4x128xf32>
    %cst_13 = arith.constant dense<0.000000e+00> : vector<2x4xf32>
    %30 = vector.multi_reduction <add>, %29, %cst_13 [2] : vector<2x4x128xf32> to vector<2x4xf32>
    %31 = vector.shape_cast %30 : vector<2x4xf32> to vector<2x4x1xf32>
    %32 = tpu.reciprocal %31 {approx = true} : vector<2x4x1xf32> -> vector<2x4x1xf32>
    %33 = vector.broadcast %32 : vector<2x4x1xf32> to vector<2x4x128xf32>
    %34 = arith.mulf %29, %33 : vector<2x4x128xf32>
    %35 = math.exp %34 : vector<2x4x128xf32>
    %cst_14 = arith.constant dense<0.000000e+00> : vector<2x4xf32>
    %36 = vector.multi_reduction <add>, %35, %cst_14 [2] : vector<2x4x128xf32> to vector<2x4xf32>
    %37 = vector.shape_cast %36 : vector<2x4xf32> to vector<2x4x1xf32>
    %38 = tpu.reciprocal %37 {approx = true} : vector<2x4x1xf32> -> vector<2x4x1xf32>
    %39 = vector.broadcast %38 : vector<2x4x1xf32> to vector<2x4x128xf32>
    %40 = arith.mulf %35, %39 : vector<2x4x128xf32>
    %cst_15 = arith.constant 0.000000e+00 : f32
    %41 = vector.broadcast %cst_15 : f32 to vector<2x4x128xf32>
    %42 = arith.subf %41, %16 : vector<2x4x128xf32>
    %43 = arith.mulf %42, %19 : vector<2x4x128xf32>
    %cst_16 = arith.constant dense<0.000000e+00> : vector<2x4xf32>
    %44 = vector.multi_reduction <add>, %43, %cst_16 [2] : vector<2x4x128xf32> to vector<2x4xf32>
    %45 = vector.shape_cast %44 : vector<2x4xf32> to vector<2x4x1xf32>
    %cst_17 = arith.constant 0.206099287 : f32
    %46 = vector.broadcast %cst_17 : f32 to vector<2x4x1xf32>
    %47 = arith.mulf %45, %46 : vector<2x4x1xf32>
    %cst_18 = arith.constant 1.000000e+00 : f32
    %48 = vector.broadcast %cst_18 : f32 to vector<2x4x1xf32>
    %49 = arith.subf %48, %47 : vector<2x4x1xf32>
    %cst_19 = arith.constant 0.425557494 : f32
    %50 = vector.broadcast %cst_19 : f32 to vector<2x4x1xf32>
    %51 = arith.mulf %50, %49 : vector<2x4x1xf32>
    %cst_20 = arith.constant 1.000000e+00 : f32
    %52 = vector.broadcast %cst_20 : f32 to vector<2x4x1xf32>
    %53 = arith.subf %52, %51 : vector<2x4x1xf32>
    %54 = vector.broadcast %53 : vector<2x4x1xf32> to vector<2x4x128xf32>
    %55 = arith.mulf %54, %40 : vector<2x4x128xf32>
    %56 = vector.broadcast %51 : vector<2x4x1xf32> to vector<2x4x128xf32>
    %57 = arith.mulf %56, %16 : vector<2x4x128xf32>
    %58 = arith.addf %55, %57 : vector<2x4x128xf32>
    %cst_21 = arith.constant 0.000000e+00 : f32
    %59 = vector.broadcast %cst_21 : f32 to vector<2x4x128xf32>
    %60 = arith.subf %59, %58 : vector<2x4x128xf32>
    %61 = arith.mulf %60, %19 : vector<2x4x128xf32>
    %c0_22 = arith.constant 0 : index
    %c0_23 = arith.constant 0 : index
    %c0_24 = arith.constant 0 : index
    %62 = vector.load %arg5[%c0_22, %c0_23, %c0_24] : memref<1x1x128xf32, #tpu.memory_space<vmem>>, vector<1x1x128xf32>
    %cst_25 = arith.constant dense<0.000000e+00> : vector<4x128xf32>
    %63 = vector.multi_reduction <add>, %61, %cst_25 [0] : vector<2x4x128xf32> to vector<4x128xf32>
    %64 = vector.shape_cast %63 : vector<4x128xf32> to vector<1x4x128xf32>
    %cst_26 = arith.constant dense<0.000000e+00> : vector<1x128xf32>
    %65 = vector.multi_reduction <add>, %64, %cst_26 [1] : vector<1x4x128xf32> to vector<1x128xf32>
    %66 = vector.shape_cast %65 : vector<1x128xf32> to vector<1x1x128xf32>
    %67 = arith.addf %62, %66 : vector<1x1x128xf32>
    %c0_27 = arith.constant 0 : index
    %c0_28 = arith.constant 0 : index
    %c0_29 = arith.constant 0 : index
    %68 = vector.load %arg5[%c0_27, %c0_28, %c0_29] : memref<1x1x128xf32, #tpu.memory_space<vmem>>, vector<1x1x128xf32>
    tpu.vector_store %arg5[%c0_27, %c0_28, %c0_29], %67 {strides = array<i32>} : memref<1x1x128xf32, #tpu.memory_space<vmem>>, vector<1x1x128xf32>,
    %c0_30 = arith.constant 0 : index
    %c0_31 = arith.constant 0 : index
    %c0_32 = arith.constant 0 : index
    %69 = vector.load %arg6[%c0_30, %c0_31, %c0_32] : memref<1x4x128xf32, #tpu.memory_space<vmem>>, vector<1x4x128xf32>
    %cst_33 = arith.constant dense<0.000000e+00> : vector<4x128xf32>
    %70 = vector.multi_reduction <add>, %3, %cst_33 [0] : vector<2x4x128xf32> to vector<4x128xf32>
    %71 = vector.shape_cast %70 : vector<4x128xf32> to vector<1x4x128xf32>
    %72 = arith.addf %69, %71 : vector<1x4x128xf32>
    %c0_34 = arith.constant 0 : index
    %c0_35 = arith.constant 0 : index
    %c0_36 = arith.constant 0 : index
    %73 = vector.load %arg6[%c0_34, %c0_35, %c0_36] : memref<1x4x128xf32, #tpu.memory_space<vmem>>, vector<1x4x128xf32>
    tpu.vector_store %arg6[%c0_34, %c0_35, %c0_36], %72 {strides = array<i32>} : memref<1x4x128xf32, #tpu.memory_space<vmem>>, vector<1x4x128xf32>,
    return
  }
  func.func @transform_0(%arg0: i32, %arg1: i32) -> (i32, i32, i32) {
    %c1_i32 = arith.constant 1 : i32
    %0 = arith.muli %arg0, %c1_i32 : i32
    %1 = arith.addi %0, %arg1 : i32
    %c0_i32 = arith.constant 0 : i32
    %2 = arith.minsi %1, %c0_i32 : i32
    %c0_i32_0 = arith.constant 0 : i32
    %c0_i32_1 = arith.constant 0 : i32
    %c0_i32_2 = arith.constant 0 : i32
    return %2, %c0_i32_0, %c0_i32_1 : i32, i32, i32
  }
  func.func @transform_1(%arg0: i32, %arg1: i32) -> (i32, i32, i32) {
    %c1_i32 = arith.constant 1 : i32
    %0 = arith.muli %arg0, %c1_i32 : i32
    %1 = arith.addi %0, %arg1 : i32
    %c0_i32 = arith.constant 0 : i32
    %2 = arith.minsi %1, %c0_i32 : i32
    %c0_i32_0 = arith.constant 0 : i32
    %c0_i32_1 = arith.constant 0 : i32
    %c0_i32_2 = arith.constant 0 : i32
    return %2, %c0_i32_0, %c0_i32_1 : i32, i32, i32
  }
  func.func @transform_2(%arg0: i32, %arg1: i32) -> (i32, i32, i32) {
    %c0_i32 = arith.constant 0 : i32
    %c0_i32_0 = arith.constant 0 : i32
    %c0_i32_1 = arith.constant 0 : i32
    %c0_i32_2 = arith.constant 0 : i32
    return %c0_i32, %c0_i32_0, %c0_i32_1 : i32, i32, i32
  }
  func.func @transform_3(%arg0: i32, %arg1: i32) -> (i32, i32, i32) {
    %c0_i32 = arith.constant 0 : i32
    %c0_i32_0 = arith.constant 0 : i32
    %c0_i32_1 = arith.constant 0 : i32
    return %arg0, %c0_i32, %c0_i32_0 : i32, i32, i32
  }
  func.func @transform_4(%arg0: i32, %arg1: i32) -> (i32, i32, i32) {
    %c0_i32 = arith.constant 0 : i32
    %c0_i32_0 = arith.constant 0 : i32
    %c0_i32_1 = arith.constant 0 : i32
    return %arg0, %c0_i32, %c0_i32_0 : i32, i32, i32
  }
}

</mosaic_0001>

<bundles_post_ra>
// kernel: tpu_custom_call.1
= control target key start
LH: loop header
LB: loop body
LE: loop exit
PB: predicated region body
PF: predicated region fallthrough
CT: control target
= control target key end

     0   :  { %10 = vsyncpa [#allocation3], 0  ;;  %s452_s0 = inlined_call_operand.hbm [shape: f32[2,4,128], index: 0, kind: input, shape index: {}]   ;;  %s453_s1 = inlined_call_operand.hbm [shape: f32[2,4,128], index: 1, kind: input, shape index: {}]   ;;  %s454_s2 = inlined_call_operand.hbm [shape: f32[1,4,128], index: 2, kind: input, shape index: {}]   ;;  %s455_s3 = inlined_call_operand.hbm [shape: f32[1,1,128], index: 3, kind: output, shape index: {0}]   ;;  %s456_s4 = inlined_call_operand.hbm [shape: f32[1,4,128], index: 4, kind: output, shape index: {1}]  }
   0x1   :  { %11 = vsyncpa [#allocation6], 0 }
   0x2   :  { %12 = vsyncpa [#allocation4], 0 }
   0x3   :  { %13 = vsyncpa [#allocation10], 0  ;;  %s384_s15 = smov [#allocation5]   ;;  %s385_s17 = smov [#allocation2]  }
   0x4   :  { %s43_s16 = sshll.u32 %s384_s15, 4  ;;  %s25_s18 = sshll.u32 %s385_s17, 4  ;;  %s44_s16 = int_to_ptr.vmem [resolvable:$true] %s43_s16  ;;  %s26_s18 = int_to_ptr.vmem [resolvable:$true] %s25_s18 }
   0x5   :  { %s284_s19 = scalar_lea.vmem %s44_s16, 128  ;;  %p289_p1 = scmp.lt.s32.totalorder %s44_s16, %s44_s16 }
   0x6   :  { %p285_p0 = scmp.ne.s32.totalorder %s44_s16, %s284_s19  ;;  %p290_p2 = scmp.lt.s32.totalorder %s284_s19, %s284_s19 }
   0x8   :  { %p291_p3 = por %p290_p2, %p289_p1 }
   0xa   :  { %p292_p4 = pnand %p291_p3, %p285_p0 }
   0xc   :  { %295 = shalt.err (!%p292_p4)
}
   0xd   :  { %s386_s20 = smov 64   ;;  %s387_s21 = smov 4  }
   0xe   :  { %49 = dma.hbm_to_vmem [thread:$0]  %s453_s1, 128, %s44_s16, [#allocation6], %s386_s20, %s386_s20, %s387_s21  }
   0xf   :  { %s304_s24 = scalar_lea.vmem %s26_s18, 128  ;;  %p309_p6 = scmp.lt.s32.totalorder %s26_s18, %s26_s18 }
  0x10   :  { %p305_p5 = scmp.ne.s32.totalorder %s26_s18, %s304_s24  ;;  %p310_p7 = scmp.lt.s32.totalorder %s304_s24, %s304_s24 }
  0x12   :  { %p311_p8 = por %p310_p7, %p309_p6 }
  0x14   :  { %p312_p9 = pnand %p311_p8, %p305_p5 }
  0x16   :  { %315 = shalt.err (!%p312_p9)
}
  0x17   :  { %31 = dma.hbm_to_vmem [thread:$0]  %s452_s0, 128, %s26_s18, [#allocation3], %s386_s20, %s386_s20, %s387_s21  }
  0x18   :  { %s388_s27 = smov [#allocation7]  }
  0x19   :  { %s56_s28 = sshll.u32 %s388_s27, 4  ;;  %s57_s28 = int_to_ptr.vmem [resolvable:$true] %s56_s28 }
  0x1a   :  { %s324_s29 = scalar_lea.vmem %s57_s28, 64  ;;  %p329_p11 = scmp.lt.s32.totalorder %s57_s28, %s57_s28 }
  0x1b   :  { %p325_p10 = scmp.ne.s32.totalorder %s57_s28, %s324_s29  ;;  %p330_p12 = scmp.lt.s32.totalorder %s324_s29, %s324_s29 }
  0x1d   :  { %p331_p13 = por %p330_p12, %p329_p11 }
  0x1f   :  { %p332_p0 = pnand %p331_p13, %p325_p10 }
  0x21   :  { %335 = shalt.err (!%p332_p0)
}
  0x22   :  { %59 = dma.hbm_to_vmem [thread:$0]  %s454_s2, 64, %s57_s28, [#allocation6]  }
  0x23   :  { %376 = dma.done.wait [#allocation3], 128  }
  0x24   :  { %377 = vsyncadd [#allocation3], 4294967168 }
  0x25   :  { %378 = dma.done.wait [#allocation6], 192  }
  0x26   :  { %379 = vsyncadd [#allocation6], 4294967104  ;;  %vm89_vm0 = vcmask 1043456   ;;  %v83_v0 = vld [vmem:[#allocation5] sm:$0xf]  ;;  %s390_s0 = smov [#allocation9]  }
  0x27   :  { %v118_v1 = vld [vmem:[#allocation7] sm:$0xf]  ;;  %v85_v2 = vld [vmem:[#allocation2] sm:$0xf]  ;;  %v201_v4 = vsel %vm89_vm0, %v83_v0, 0.0  ;;  %s222_s2 = sshll.u32 %s390_s0, 4  ;;  %s223_s2 = int_to_ptr.vmem [resolvable:$true] %s222_s2 }
  0x28   :  { %v119_v3 = vsub.f32 %v83_v0, %v118_v1  ;;  %v87_v5 = vmul.f32 10.0, %v85_v2  ;;  %v84_v6 = vld [vmem:[#allocation5 + $0x4] sm:$0xf]  ;;  %v86_v7 = vld [vmem:[#allocation2 + $0x4] sm:$0xf]  ;;  %s336_s5 = scalar_lea.vmem %s223_s2, 64  ;;  %p341_p2 = scmp.lt.s32.totalorder %s223_s2, %s223_s2 }
  0x29   :  { %v120_v8 = vsub.f32 %v84_v6, %v118_v1  ;;  %v202_v9 = vsel %vm89_vm0, %v84_v6, 0.0  ;;  %v88_v10 = vmul.f32 10.0, %v86_v7  ;;  %p337_p1 = scmp.ne.s32.totalorder %s223_s2, %s336_s5  ;;  %p342_p3 = scmp.lt.s32.totalorder %s336_s5, %s336_s5 }
  0x2a   :  { %v121_v11 = vmul.f32 14.285714, %v119_v3  ;;  %v90_v12 = vsel %vm89_vm0, %v87_v5, -inf  ;;  %v429_v13 = vadd.f32 %v202_v9, %v201_v4  ;;  %v389_v4 = vmov 0.0  }
  0x2b   :  { %91 = vmax.xlane.f32.xlu1 %v90_v12  ;;  %v122_v14 = vmul.f32 14.285714, %v120_v8  ;;  %v93_v16 = vsel %vm89_vm0, %v88_v10, -inf  ;;  %81 = vst [vmem:[#allocation8] sm:$0x1] %v389_v4  ;;  %p343_p4 = por %p342_p3, %p341_p2 }
  0x2c   :  { %v123_v15 = vsel %vm89_vm0, %v121_v11, -inf  ;;  %82 = vst [vmem:[#allocation9] sm:$0xf] %v389_v4 }
  0x2d   :  { %124 = vmax.xlane.f32.xlu0 %v123_v15  ;;  %v126_v17 = vsel %vm89_vm0, %v122_v14, -inf  ;;  %p344_p5 = pnand %p343_p4, %p337_p1 }
  0x2f   :  { %94 = vmax.xlane.f32.xlu1 %v93_v16 }
  0x31   :  { %127 = vmax.xlane.f32.xlu0 %v126_v17 }
  0xb4   :  { %v92_v18 = vpop.xlane.xlu1 %91 }
  0xb5   :  { %v96_v19 = vsub.f32 %v87_v5, %v92_v18  ;;  %v200_v5 = vld [vmem:[#allocation9] sm:$0xf] }
  0xb6   :  { %v125_v20 = vpop.xlane.xlu0 %124  ;;  %v204_v6 = vadd.f32 %v429_v13, %v200_v5 }
  0xb7   :  { %v129_v21 = vsub.f32 %v121_v11, %v125_v20  ;;  %v98_v22 = vmul.f32 1.442695, %v96_v19 }
  0xb8   :  { %v95_v23 = vpop.xlane.xlu1 %94  ;;  %205 = vst [vmem:[#allocation9] sm:$0xf] %v204_v6 }
  0xb9   :  { %v131_v24 = vmul.f32 1.442695, %v129_v21  ;;  %v97_v25 = vsub.f32 %v88_v10, %v95_v23  ;;  %248 = vpow2.f32 %v98_v22 }
  0xba   :  { %v128_v26 = vpop.xlane.xlu0 %127 }
  0xbb   :  { %250 = vpow2.f32 %v131_v24  ;;  %v130_v27 = vsub.f32 %v122_v14, %v128_v26  ;;  %v100_v28 = vmul.f32 1.442695, %v97_v25 }
  0xbd   :  { %v133_v29 = vmul.f32 1.442695, %v130_v27  ;;  %252 = vpow2.f32 %v100_v28 }
  0xbf   :  { %254 = vpow2.f32 %v133_v29 }
  0xc6   :  { %v249_v30 = vpop.eup %248 }
  0xc7   :  { %v102_v34 = vsel %vm89_vm0, %v249_v30, 0.0 }
  0xc8   :  { %v251_v31 = vpop.eup %250 }
  0xc9   :  { %v135_v32 = vsel %vm89_vm0, %v251_v31, 0.0 }
  0xca   :  { %136 = vadd.xlane.f32.xlu0 %v135_v32  ;;  %v253_v33 = vpop.eup %252 }
  0xcb   :  { %v105_v37 = vsel %vm89_vm0, %v253_v33, 0.0 }
  0xcc   :  { %v255_v35 = vpop.eup %254 }
  0xcd   :  { %v138_v36 = vsel %vm89_vm0, %v255_v35, 0.0 }
  0xce   :  { %103 = vadd.xlane.f32.xlu0 %v102_v34  ;;  %139 = vadd.xlane.f32.xlu1 %v138_v36 }
  0xd2   :  { %106 = vadd.xlane.f32.xlu1 %v105_v37 }
 0x153   :  { %v137_v38 = vpop.xlane.xlu0 %136 }
 0x154   :  { %256 = vrcp.f32 %v137_v38 }
 0x157   :  { %v140_v39 = vpop.xlane.xlu1 %139  ;;  %v104_v40 = vpop.xlane.xlu0 %103 }
 0x158   :  { %258 = vrcp.f32 %v140_v39 }
 0x159   :  { %260 = vrcp.f32 %v104_v40 }
 0x15a   :  { %262 = vlog2.f32 %v104_v40 }
 0x15b   :  { %v107_v41 = vpop.xlane.xlu1 %106 }
 0x15c   :  { %264 = vrcp.f32 %v107_v41 }
 0x15d   :  { %266 = vlog2.f32 %v107_v41 }
 0x161   :  { %v257_v42 = vpop.eup %256 }
 0x162   :  { %v143_v43 = vmul.f32 %v257_v42, %v251_v31 }
 0x164   :  { %v145_v44 = vmul.f32 1.442695, %v143_v43 }
 0x165   :  { %v259_v45 = vpop.eup %258 }
 0x166   :  { %v144_v46 = vmul.f32 %v259_v45, %v255_v35  ;;  %268 = vpow2.f32 %v145_v44  ;;  %v261_v47 = vpop.eup %260 }
 0x167   :  { %v263_v49 = vpop.eup %262  ;;  %v110_v52 = vmul.f32 %v261_v47, %v249_v30 }
 0x168   :  { %v147_v48 = vmul.f32 1.442695, %v144_v46  ;;  %v113_v51 = vmul.f32 0.6931472, %v263_v49 }
 0x169   :  { %v265_v50 = vpop.eup %264  ;;  %v159_v56 = vsub.f32 0.0, %v110_v52 }
 0x16a   :  { %270 = vpow2.f32 %v147_v48  ;;  %v267_v53 = vpop.eup %266  ;;  %v116_v55 = vsub.f32 %v96_v19, %v113_v51  ;;  %v111_v57 = vmul.f32 %v265_v50, %v253_v33 }
 0x16b   :  { %v115_v54 = vmul.f32 0.6931472, %v267_v53 }
 0x16c   :  { %v161_v60 = vmul.f32 %v159_v56, %v116_v55  ;;  %v160_v62 = vsub.f32 0.0, %v111_v57 }
 0x16d   :  { %v117_v61 = vsub.f32 %v97_v25, %v115_v54 }
 0x16e   :  { %v163_v1 = vsel %vm89_vm0, %v161_v60, 0.0 }
 0x16f   :  { %v162_v2 = vmul.f32 %v160_v62, %v117_v61 }
 0x171   :  { %v166_v3 = vsel %vm89_vm0, %v162_v2, 0.0 }
 0x173   :  { %v269_v58 = vpop.eup %268 }
 0x174   :  { %v149_v59 = vsel %vm89_vm0, %v269_v58, 0.0 }
 0x175   :  { %150 = vadd.xlane.f32.xlu0 %v149_v59 }
 0x177   :  { %v271_v63 = vpop.eup %270 }
 0x178   :  { %v152_v0 = vsel %vm89_vm0, %v271_v63, 0.0 }
 0x179   :  { %153 = vadd.xlane.f32.xlu1 %v152_v0  ;;  %164 = vadd.xlane.f32.xlu0 %v163_v1 }
 0x17d   :  { %167 = vadd.xlane.f32.xlu1 %v166_v3 }
 0x17e   :  { %347 = shalt.err (!%p344_p5)
}
 0x17f   :  { %225 = dma.vmem_to_hbm [thread:$0]  %s223_s2, 64, %s456_s4, [#allocation10]   ;;  %v187_v42 = vld [vmem:[#allocation8] sm:$0x1] }
 0x180   :  { %s391_s4 = smov [#allocation8]  }
 0x181   :  { %s212_s8 = sshll.u32 %s391_s4, 4  ;;  %s213_s8 = int_to_ptr.vmem [resolvable:$true] %s212_s8 }
 0x182   :  { %s356_s9 = scalar_lea.vmem %s213_s8, 16  ;;  %s360_s10 = scalar_lea.vmem %s213_s8, 32 }
 0x183   :  { %p357_p6 = scmp.ne.s32.totalorder %s213_s8, %s356_s9  ;;  %p361_p7 = scmp.lt.s32.totalorder %s213_s8, %s213_s8 }
 0x184   :  { %p362_p8 = scmp.lt.s32.totalorder %s360_s10, %s356_s9 }
 0x186   :  { %p363_p9 = por %p362_p8, %p361_p7 }
 0x188   :  { %p364_p10 = pnand %p363_p9, %p357_p6 }
 0x1fe   :  { %v151_v7 = vpop.xlane.xlu0 %150 }
 0x1ff   :  { %272 = vrcp.f32 %v151_v7 }
 0x202   :  { %v154_v8 = vpop.xlane.xlu1 %153  ;;  %v165_v9 = vpop.xlane.xlu0 %164 }
 0x203   :  { %274 = vrcp.f32 %v154_v8  ;;  %v169_v10 = vmul.f32 0.20609929, %v165_v9 }
 0x205   :  { %v171_v11 = vsub.f32 1.0, %v169_v10 }
 0x206   :  { %v168_v12 = vpop.xlane.xlu1 %167 }
 0x207   :  { %v170_v13 = vmul.f32 0.20609929, %v168_v12  ;;  %v173_v14 = vmul.f32 0.4255575, %v171_v11 }
 0x209   :  { %v172_v15 = vsub.f32 1.0, %v170_v13  ;;  %v175_v18 = vsub.f32 1.0, %v173_v14  ;;  %v179_v21 = vmul.f32 %v173_v14, %v110_v52 }
 0x20b   :  { %v174_v19 = vmul.f32 0.4255575, %v172_v15 }
 0x20c   :  { %v273_v16 = vpop.eup %272 }
 0x20d   :  { %v157_v17 = vmul.f32 %v273_v16, %v269_v58  ;;  %v176_v25 = vsub.f32 1.0, %v174_v19  ;;  %v180_v28 = vmul.f32 %v174_v19, %v111_v57 }
 0x20f   :  { %v177_v20 = vmul.f32 %v175_v18, %v157_v17 }
 0x210   :  { %v275_v22 = vpop.eup %274 }
 0x211   :  { %v181_v23 = vadd.f32 %v179_v21, %v177_v20  ;;  %v158_v24 = vmul.f32 %v275_v22, %v271_v63 }
 0x213   :  { %v183_v26 = vsub.f32 0.0, %v181_v23  ;;  %v178_v27 = vmul.f32 %v176_v25, %v158_v24 }
 0x215   :  { %v182_v29 = vadd.f32 %v180_v28, %v178_v27  ;;  %v185_v30 = vmul.f32 %v183_v26, %v116_v55 }
 0x217   :  { %v184_v31 = vsub.f32 0.0, %v182_v29  ;;  %v188_v33 = vsel %vm89_vm0, %v185_v30, 0.0 }
 0x219   :  { %v186_v32 = vmul.f32 %v184_v31, %v117_v61 }
 0x21b   :  { %v189_v34 = vsel %vm89_vm0, %v186_v32, 0.0 }
 0x21c   :  { %v190_v35 = vadd.f32 %v189_v34, %v188_v33 }
 0x21e   :  { %v191_v36 = vsel %vm89_vm0, %v190_v35, 0.0 }
 0x21f   :  { %v192_v37 = vrot.slane %v191_v36, 4 }
 0x221   :  { %v193_v38 = vadd.f32 %v192_v37, %v191_v36 }
 0x223   :  { %v194_v39 = vrot.slane %v193_v38, 2 }
 0x225   :  { %v195_v40 = vadd.f32 %v194_v39, %v193_v38 }
 0x227   :  { %v196_v41 = vrot.slane %v195_v40, 1 }
 0x229   :  { %v197_v43 = vadd.f32 %v196_v41, %v195_v40 }
 0x22b   :  { %v198_v44 = vadd.f32 %v197_v43, %v187_v42 }
 0x22d   :  { %199 = vst [vmem:[#allocation8] sm:$0x1] %v198_v44 }
 0x22e   :  { %367 = shalt.err (!%p364_p10)
}
 0x22f   :  { %215 = dma.vmem_to_hbm [thread:$0]  %s213_s8, 16, %s455_s3, [#allocation4]  }
 0x230   :  { %380 = dma.done.wait [#allocation4], 16  }
 0x231   :  { %381 = vsyncadd [#allocation4], 4294967280 }
 0x232   :  { %382 = dma.done.wait [#allocation10], 64  }
 0x233   :  { %383 = vsyncadd [#allocation10], 4294967232 }
 0x234   :  { %232 = vsyncpa [#allocation3], 1 }
 0x235   :  { %233 = vsyncpa [#allocation6], 1 }
 0x236   :  { %234 = vsyncpa [#allocation4], 1 }
 0x237   :  { %235 = vsyncpa [#allocation10], 1 }

</bundles_post_ra>
